<compile_context>
chip_gen: v6e
topology: v6e:2x2x1
jax: 0.10.0
libtpu: 0.0.40
codegen_flags: <defaults>
</compile_context>

<pallas_src>
import math

import jax
import jax.numpy as jnp
from jax import lax
from jax.experimental import pallas as pl
from jax.experimental.pallas import tpu as pltpu


# ----------------------------------------------------------------------------
# Kernel 1: position hint  ->  np_hint = sum(pre_pos, axis=0).clip(0, 1)
# Tiled over H so it pipelines at production sizes (512x512, many lines).
# ----------------------------------------------------------------------------
def _hint_kernel(pos_ref, out_ref):
    s = jnp.sum(pos_ref[...], axis=0)
    out_ref[...] = jnp.clip(s, 0.0, 1.0)


def compute_np_hint(pre_pos_stack):
    """pre_pos_stack: (n_lines, H, W) float32 -> (H, W) float32."""
    n, H, W = pre_pos_stack.shape
    block_h = 128 if (H % 128 == 0) else H       # lane-dense rows; full H if small
    grid = (H // block_h,)
    return pl.pallas_call(
        _hint_kernel,
        out_shape=jax.ShapeDtypeStruct((H, W), jnp.float32),
        grid=grid,
        in_specs=[pl.BlockSpec((n, block_h, W), lambda i: (0, i, 0))],
        out_specs=pl.BlockSpec((block_h, W), lambda i: (i, 0)),
        compiler_params=pltpu.CompilerParams(
            dimension_semantics=("parallel",)),
    )(pre_pos_stack)


# ----------------------------------------------------------------------------
# Kernel 2: synthetic FrozenCLIPEmbedderT3-style text-encoder block
#   x -> LN1 -> causal single-head attention -> +res -> LN2 -> MLP(quickGELU)
#     -> +res -> final LN
# One grid step per *distinct* sequence (prompt, negative prompt).
# Weights are bf16 (MXU-native, half the DMA); all elementwise math f32.
# ----------------------------------------------------------------------------
def _layer_norm(x, g, b, eps=1e-5):
    mu = jnp.mean(x, axis=-1, keepdims=True)
    var = jnp.mean((x - mu) * (x - mu), axis=-1, keepdims=True)
    return (x - mu) * lax.rsqrt(var + eps) * g + b


def _clip_layer_kernel(x_ref, mask_ref,
                       wq_ref, bq_ref, wk_ref, bk_ref, wv_ref, bv_ref,
                       wo_ref, bo_ref,
                       ln1g_ref, ln1b_ref,
                       w1_ref, b1_ref, w2_ref, b2_ref,
                       ln2g_ref, ln2b_ref,
                       lnfg_ref, lnfb_ref,
                       out_ref):
    x = x_ref[...].astype(jnp.float32)          # (S, D)
    S, D = x.shape

    # --- self attention (single head; synthetic encoder) ---
    h = _layer_norm(x, ln1g_ref[...], ln1b_ref[...])
    h_lo = h.astype(jnp.bfloat16)
    q = jnp.dot(h_lo, wq_ref[...], preferred_element_type=jnp.float32) + bq_ref[...]
    k = jnp.dot(h_lo, wk_ref[...], preferred_element_type=jnp.float32) + bk_ref[...]
    v = jnp.dot(h_lo, wv_ref[...], preferred_element_type=jnp.float32) + bv_ref[...]

    scale = 1.0 / math.sqrt(D)
    # contract last axes of q and k: no explicit k.T / XLU transpose
    s = lax.dot_general(q, k, dimension_numbers=(((1,), (1,)), ((), ())),
                        preferred_element_type=jnp.float32) * scale   # (S, S)
    s = s + mask_ref[...]                       # precomputed additive causal mask

    m = jnp.max(s, axis=-1, keepdims=True)
    p = jnp.exp(s - m)
    p = p * pl.reciprocal(jnp.sum(p, axis=-1, keepdims=True), approx=True)

    a = jnp.dot(p, v, preferred_element_type=jnp.float32)             # (S, D)
    a = jnp.dot(a.astype(jnp.bfloat16), wo_ref[...],
                preferred_element_type=jnp.float32) + bo_ref[...]
    x = x + a

    # --- MLP with quick-GELU (x * sigmoid(1.702 x)) ---
    h2 = _layer_norm(x, ln2g_ref[...], ln2b_ref[...])
    mlp = jnp.dot(h2.astype(jnp.bfloat16), w1_ref[...],
                  preferred_element_type=jnp.float32) + b1_ref[...]
    mlp = mlp * jax.nn.sigmoid(1.702 * mlp)
    mlp = jnp.dot(mlp.astype(jnp.bfloat16), w2_ref[...],
                  preferred_element_type=jnp.float32) + b2_ref[...]
    x = x + mlp

    # --- final layer norm (encoder output) ---
    out_ref[...] = _layer_norm(x, lnfg_ref[...], lnfb_ref[...]).astype(out_ref.dtype)


def clip_text_encode(x, attn_mask, params):
    """x: (N_seq, S, D) float32 -> (N_seq, S, D) float32.

    One grid step per distinct sequence (e.g. prompt + negative prompt),
    sharded across TensorCores via dimension_semantics=('parallel',).
    """
    N, S, D = x.shape
    weights = [
        params["wq"], params["bq"], params["wk"], params["bk"],
        params["wv"], params["bv"], params["wo"], params["bo"],
        params["ln1_g"], params["ln1_b"],
        params["w1"], params["b1"], params["w2"], params["b2"],
        params["ln2_g"], params["ln2_b"],
        params["lnf_g"], params["lnf_b"],
    ]

    def full_spec(w):
        nd = w.ndim
        return pl.BlockSpec(w.shape, lambda b, _nd=nd: (0,) * _nd)

    in_specs = [pl.BlockSpec((None, S, D), lambda b: (b, 0, 0)),   # x
                pl.BlockSpec((S, S), lambda b: (0, 0))]            # causal mask
    in_specs += [full_spec(w) for w in weights]

    # TODO(synk): for the real 12+-layer CLIP encoder, iterate layers on a grid
    # axis with weight prefetch and tile S to 128 rows per MXU call.
    return pl.pallas_call(
        _clip_layer_kernel,
        out_shape=jax.ShapeDtypeStruct((N, S, D), jnp.float32),
        grid=(N,),
        in_specs=in_specs,
        out_specs=pl.BlockSpec((None, S, D), lambda b: (b, 0, 0)),
        compiler_params=pltpu.CompilerParams(
            dimension_semantics=("parallel",),
            vmem_limit_bytes=32 * 1024 * 1024),
    )(x, attn_mask, *weights)


# ----------------------------------------------------------------------------
# Parameter / glue setup (deterministic, synthetic)
# ----------------------------------------------------------------------------
def make_clip_params(key, d_model, d_ff, vocab=64, seq=8):
    ks = jax.random.split(key, 8)
    sd = 0.02
    bf16 = jnp.bfloat16
    p = {
        # matmul weights stored bf16 (half the HBM->VMEM traffic; f32 MXU acc)
        "wq": (sd * jax.random.normal(ks[0], (d_model, d_model), jnp.float32)).astype(bf16),
        "wk": (sd * jax.random.normal(ks[1], (d_model, d_model), jnp.float32)).astype(bf16),
        "wv": (sd * jax.random.normal(ks[2], (d_model, d_model), jnp.float32)).astype(bf16),
        "wo": (sd * jax.random.normal(ks[3], (d_model, d_model), jnp.float32)).astype(bf16),
        "w1": (sd * jax.random.normal(ks[4], (d_model, d_ff), jnp.float32)).astype(bf16),
        "w2": (sd * jax.random.normal(ks[5], (d_ff, d_model), jnp.float32)).astype(bf16),
        # biases / LN params stay f32 (elementwise math in f32, v5e-safe)
        "bq": jnp.zeros((1, d_model), jnp.float32),
        "bk": jnp.zeros((1, d_model), jnp.float32),
        "bv": jnp.zeros((1, d_model), jnp.float32),
        "bo": jnp.zeros((1, d_model), jnp.float32),
        "b1": jnp.zeros((1, d_ff), jnp.float32),
        "b2": jnp.zeros((1, d_model), jnp.float32),
        "ln1_g": jnp.ones((1, d_model), jnp.float32),
        "ln1_b": jnp.zeros((1, d_model), jnp.float32),
        "ln2_g": jnp.ones((1, d_model), jnp.float32),
        "ln2_b": jnp.zeros((1, d_model), jnp.float32),
        "lnf_g": jnp.ones((1, d_model), jnp.float32),
        "lnf_b": jnp.zeros((1, d_model), jnp.float32),
        "tok_emb": sd * jax.random.normal(ks[6], (vocab, d_model), jnp.float32),
        "pos_emb": sd * jax.random.normal(ks[7], (seq, d_model), jnp.float32),
    }
    return p


def arr2tensor(arr_hwc, bs):
    """HWC float array -> (bs, C, H, W), mirroring the PyTorch arr2tensor."""
    a = jnp.transpose(arr_hwc, (2, 0, 1)).astype(jnp.float32)
    return jnp.broadcast_to(a[None], (bs,) + a.shape)


def text_embedding_module_forward(prompt_ids, negative_ids, pre_pos, glyphs_list,
                                  gly_line_list, params, num_images_per_prompt):
    """Mirrors TextEmbeddingModule.forward tensor semantics.

    prompt_ids / negative_ids: (S,) int32 token ids.
    pre_pos: list of (H, W, 1) float32 position masks in [0, 1].
    Returns (prompt_embeds, negative_prompt_embeds, text_info, np_hint).
    """
    B = num_images_per_prompt
    S = prompt_ids.shape[0]
    D = params["tok_emb"].shape[1]

    # np_hint = sum(pre_pos).clip(0, 1)   (Pallas kernel, tiled over H)
    pos_stack = jnp.stack([p[..., 0] for p in pre_pos], axis=0).astype(jnp.float32)
    np_hint = compute_np_hint(pos_stack)[..., None]          # (H, W, 1)

    # text_info (arr2tensor glue — matches torch layout NCHW)
    text_info = {
        "glyphs": [arr2tensor(g, B) for g in glyphs_list],
        "gly_line": [arr2tensor(g, B) for g in gly_line_list],
        "positions": [arr2tensor(p, B) for p in pre_pos],
        "n_lines": [len(glyphs_list)] * B,
    }

    # TODO(synk): embedding_manager.encode_text / OCR recognizer (PaddleOCR rec
    # model) are external frozen models; the glyph-conditioned token replacement
    # is not reproduced here.

    # Build the additive causal mask ONCE on the host (not per grid step).
    row = jnp.arange(S)[:, None]
    col = jnp.arange(S)[None, :]
    attn_mask = jnp.where(row >= col, 0.0, -1e30).astype(jnp.float32)   # (S, S)

    def embed(ids):
        return jnp.take(params["tok_emb"], ids, axis=0) + params["pos_emb"]   # (S, D)

    # Prompt + negative prompt fused into a single 2-row batch: one pallas_call,
    # no redundant per-image recompute — the per-image copies are broadcasts.
    x2 = jnp.stack([embed(prompt_ids), embed(negative_ids)], axis=0)    # (2, S, D)
    enc = clip_text_encode(x2, attn_mask, params)                       # (2, S, D)

    prompt_embeds = jnp.broadcast_to(enc[0][None], (B, S, D))
    negative_prompt_embeds = jnp.broadcast_to(enc[1][None], (B, S, D))
    return prompt_embeds, negative_prompt_embeds, text_info, np_hint


# ----------------------------------------------------------------------------
# main
# ----------------------------------------------------------------------------
if __name__ == "__main__":
    key = jax.random.PRNGKey(0)
    k_pos, k_tok, k_neg, k_par = jax.random.split(key, 4)

    # Small shapes consistent with the forward pass (lane-dense hidden dims)
    H = W = 64           # position / hint maps (original: 512x512)
    GLY = 128            # glyph canvas at gly_scale=2 (original: 1024x1024)
    GH, GW = 16, 64      # glyph line strip (original: 80x512)
    S, D, FF = 8, 128, 512
    n_lines = 2
    num_images_per_prompt = 2

    params = make_clip_params(k_par, D, FF, vocab=64, seq=S)

    # Deterministic synthetic position masks (stand-ins for cv2 component maps)
    noise = jax.random.uniform(k_pos, (n_lines, H, W, 1))
    pre_pos = [(noise[i] > 0.7).astype(jnp.float32) for i in range(n_lines)]

    # Deterministic synthetic glyph renderings (stand-ins for PIL rasterization)
    glyphs_list = [
        (jax.random.uniform(jax.random.fold_in(k_pos, 10 + i), (GLY, GLY, 1)) > 0.9)
        .astype(jnp.float32) for i in range(n_lines)
    ]
    gly_line_list = [
        (jax.random.uniform(jax.random.fold_in(k_pos, 20 + i), (GH, GW, 1)) > 0.9)
        .astype(jnp.float32) for i in range(n_lines)
    ]

    prompt_ids = jax.random.randint(k_tok, (S,), 0, 64, dtype=jnp.int32)
    negative_ids = jax.random.randint(k_neg, (S,), 0, 64, dtype=jnp.int32)

    prompt_embeds, neg_embeds, text_info, np_hint = text_embedding_module_forward(
        prompt_ids, negative_ids, pre_pos, glyphs_list, gly_line_list,
        params, num_images_per_prompt)

    jax.block_until_ready((prompt_embeds, neg_embeds, np_hint))
    assert prompt_embeds.shape == (num_images_per_prompt, S, D)
    assert neg_embeds.shape == (num_images_per_prompt, S, D)
    assert np_hint.shape == (H, W, 1)
    assert text_info["glyphs"][0].shape == (num_images_per_prompt, 1, GLY, GLY)
    assert bool(jnp.all(jnp.isfinite(prompt_embeds)))
    print("KERNEL_OK")
</pallas_src>

<mosaic_0001>
module attributes {stable_mosaic.version = 11 : i64} {
  func.func @_hint_kernel(%arg0: i32, %arg1: memref<2x64x64xf32, #tpu.memory_space<vmem>>, %arg2: memref<64x64xf32, #tpu.memory_space<vmem>>) attributes {dimension_semantics = [#tpu.dimension_semantics<parallel>], iteration_bounds = array<i64: 1>, scalar_prefetch = 0 : i64, scratch_operands = 0 : i64, tpu.core_type = #tpu.core_type<tc>, window_params = [{transform_indices = @transform_0, window_bounds = array<i64: 2, 64, 64>}, {transform_indices = @transform_1, window_bounds = array<i64: 64, 64>}]} {
    %c0 = arith.constant 0 : index
    %c0_0 = arith.constant 0 : index
    %c0_1 = arith.constant 0 : index
    %0 = vector.load %arg1[%c0, %c0_0, %c0_1] : memref<2x64x64xf32, #tpu.memory_space<vmem>>, vector<2x64x64xf32>
    %cst = arith.constant dense<0.000000e+00> : vector<64x64xf32>
    %1 = vector.multi_reduction <add>, %0, %cst [0] : vector<2x64x64xf32> to vector<64x64xf32>
    %cst_2 = arith.constant 0.000000e+00 : f32
    %cst_3 = arith.constant 1.000000e+00 : f32
    %2 = vector.broadcast %cst_2 : f32 to vector<64x64xf32>
    %3 = arith.maximumf %2, %1 : vector<64x64xf32>
    %4 = vector.broadcast %cst_3 : f32 to vector<64x64xf32>
    %5 = arith.minimumf %4, %3 : vector<64x64xf32>
    %c0_4 = arith.constant 0 : index
    %c0_5 = arith.constant 0 : index
    %6 = vector.load %arg2[%c0_4, %c0_5] : memref<64x64xf32, #tpu.memory_space<vmem>>, vector<64x64xf32>
    tpu.vector_store %arg2[%c0_4, %c0_5], %5 {strides = array<i32>} : memref<64x64xf32, #tpu.memory_space<vmem>>, vector<64x64xf32>,
    return
  }
  func.func @transform_0(%arg0: i32) -> (i32, i32, i32) {
    %c0_i32 = arith.constant 0 : i32
    %c0_i32_0 = arith.constant 0 : i32
    %c0_i32_1 = arith.constant 0 : i32
    return %c0_i32, %arg0, %c0_i32_0 : i32, i32, i32
  }
  func.func @transform_1(%arg0: i32) -> (i32, i32) {
    %c0_i32 = arith.constant 0 : i32
    %c0_i32_0 = arith.constant 0 : i32
    return %arg0, %c0_i32 : i32, i32
  }
}

</mosaic_0001>

<bundles_post_ra>
// kernel: tpu_custom_call.1
= control target key start
LH: loop header
LB: loop body
LE: loop exit
PB: predicated region body
PF: predicated region fallthrough
CT: control target
= control target key end

     0   :  { %6 = vsyncpa [#allocation3], 0  ;;  %s203_s0 = inlined_call_operand.hbm [shape: f32[2,64,64], index: 0, kind: input, shape index: {}]   ;;  %s204_s1 = inlined_call_operand.hbm [shape: f32[64,64], index: 1, kind: output, shape index: {}]  }
   0x1   :  { %7 = vsyncpa [#allocation4], 0  ;;  %s153_s6 = smov [#allocation2]  }
   0x2   :  { %s13_s7 = sshll.u32 %s153_s6, 4  ;;  %s14_s7 = int_to_ptr.vmem [resolvable:$true] %s13_s7 }
   0x3   :  { %s117_s8 = scalar_lea.vmem %s14_s7, 2048  ;;  %p122_p1 = scmp.lt.s32.totalorder %s14_s7, %s14_s7 }
   0x4   :  { %p118_p0 = scmp.ne.s32.totalorder %s14_s7, %s117_s8  ;;  %p123_p2 = scmp.lt.s32.totalorder %s117_s8, %s117_s8 }
   0x6   :  { %p124_p3 = por %p123_p2, %p122_p1 }
   0x8   :  { %p125_p4 = pnand %p124_p3, %p118_p0 }
   0xa   :  { %128 = shalt.err (!%p125_p4)
}
   0xb   :  { %s154_s9 = smov 128   ;;  %s155_s10 = smov 8  }
   0xc   :  { %19 = dma.hbm_to_vmem [thread:$0]  %s203_s0, 2048, %s14_s7, [#allocation3], %s154_s9, %s154_s9, %s155_s10  }
   0xd   :  { %149 = dma.done.wait [#allocation3], 2048  }
   0xe   :  { %150 = vsyncadd [#allocation3], 4294965248  ;;  %vm39_vm0 = vcmask 523264   ;;  %v23_v0 = vld [vmem:[#allocation2] sm:$0xff]  ;;  %v24_v2 = vld [vmem:[#allocation2 + $0x8] sm:$0xff]  ;;  %s156_s0 = smov [#allocation5]  }
   0xf   :  { %v31_v1 = vld [vmem:[#allocation2 + $0x40] sm:$0xff]  ;;  %v40_v3 = vsel %vm39_vm0, %v23_v0, 0.0  ;;  %v32_v5 = vld [vmem:[#allocation2 + $0x48] sm:$0xff]  ;;  %v43_v6 = vsel %vm39_vm0, %v24_v2, 0.0  ;;  %v25_v7 = vld [vmem:[#allocation2 + $0x10] sm:$0xff]  ;;  %s93_s13 = sshll.u32 %s156_s0, 4  ;;  %s94_s13 = int_to_ptr.vmem [resolvable:$true] %s93_s13 }
  0x10   :  { %v41_v4 = vsel %vm39_vm0, %v31_v1, 0.0  ;;  %v33_v8 = vld [vmem:[#allocation2 + $0x50] sm:$0xff]  ;;  %v44_v10 = vsel %vm39_vm0, %v32_v5, 0.0  ;;  %v46_v11 = vsel %vm39_vm0, %v25_v7, 0.0  ;;  %v26_v13 = vld [vmem:[#allocation2 + $0x18] sm:$0xff]  ;;  %v27_v15 = vld [vmem:[#allocation2 + $0x20] sm:$0xff]  ;;  %p134_p6 = scmp.lt.s32.totalorder %s94_s13, %s94_s13 }
  0x11   :  { %v42_v9 = vadd.f32 %v41_v4, %v40_v3  ;;  %v47_v12 = vsel %vm39_vm0, %v33_v8, 0.0  ;;  %v34_v14 = vld [vmem:[#allocation2 + $0x58] sm:$0xff]  ;;  %v45_v16 = vadd.f32 %v44_v10, %v43_v6  ;;  %v49_v18 = vsel %vm39_vm0, %v26_v13, 0.0  ;;  %v35_v20 = vld [vmem:[#allocation2 + $0x60] sm:$0xff]  ;;  %v28_v21 = vld [vmem:[#allocation2 + $0x28] sm:$0xff]  ;;  %s129_s14 = scalar_lea.vmem %s94_s13, 1024 }
  0x12   :  { %v48_v17 = vadd.f32 %v47_v12, %v46_v11  ;;  %v50_v19 = vsel %vm39_vm0, %v34_v14, 0.0  ;;  %v36_v22 = vld [vmem:[#allocation2 + $0x68] sm:$0xff]  ;;  %v52_v25 = vsel %vm39_vm0, %v27_v15, 0.0  ;;  %v53_v26 = vsel %vm39_vm0, %v35_v20, 0.0  ;;  %v29_v27 = vld [vmem:[#allocation2 + $0x30] sm:$0xff]  ;;  %v30_v33 = vld [vmem:[#allocation2 + $0x38] sm:$0xff]  ;;  %p130_p5 = scmp.ne.s32.totalorder %s94_s13, %s129_s14  ;;  %p135_p7 = scmp.lt.s32.totalorder %s129_s14, %s129_s14 }
  0x13   :  { %v64_v23 = vmax.f32 %v42_v9, 0.0  ;;  %v51_v24 = vadd.f32 %v50_v19, %v49_v18  ;;  %v65_v28 = vmax.f32 %v45_v16, 0.0  ;;  %v54_v30 = vadd.f32 %v53_v26, %v52_v25  ;;  %v37_v32 = vld [vmem:[#allocation2 + $0x70] sm:$0xff]  ;;  %v38_v34 = vld [vmem:[#allocation2 + $0x78] sm:$0xff] }
  0x14   :  { %v66_v29 = vmax.f32 %v48_v17, 0.0  ;;  %v55_v31 = vsel %vm39_vm0, %v28_v21, 0.0  ;;  %v56_v37 = vsel %vm39_vm0, %v36_v22, 0.0  ;;  %v58_v38 = vsel %vm39_vm0, %v29_v27, 0.0  ;;  %p136_p8 = por %p135_p7, %p134_p6 }
  0x15   :  { %v72_v35 = vmin.f32 %v64_v23, 1.0  ;;  %v67_v36 = vmax.f32 %v51_v24, 0.0  ;;  %v73_v39 = vmin.f32 %v65_v28, 1.0  ;;  %v68_v41 = vmax.f32 %v54_v30, 0.0 }
  0x16   :  { %v74_v40 = vmin.f32 %v66_v29, 1.0  ;;  %v57_v42 = vadd.f32 %v56_v37, %v55_v31  ;;  %v59_v44 = vsel %vm39_vm0, %v37_v32, 0.0  ;;  %v61_v45 = vsel %vm39_vm0, %v30_v33, 0.0  ;;  %p137_p9 = pnand %p136_p8, %p130_p5 }
  0x17   :  { %80 = vst.msk [vmem:[#allocation5] sm:$0xff] %vm39_vm0, %v72_v35  ;;  %v75_v43 = vmin.f32 %v67_v36, 1.0  ;;  %v62_v46 = vsel %vm39_vm0, %v38_v34, 0.0  ;;  %81 = vst.msk [vmem:[#allocation5 + $0x8] sm:$0xff] %vm39_vm0, %v73_v39  ;;  %v76_v47 = vmin.f32 %v68_v41, 1.0  ;;  %v60_v49 = vadd.f32 %v59_v44, %v58_v38 }
  0x18   :  { %82 = vst.msk [vmem:[#allocation5 + $0x10] sm:$0xff] %vm39_vm0, %v74_v40  ;;  %v69_v48 = vmax.f32 %v57_v42, 0.0  ;;  %v63_v50 = vadd.f32 %v62_v46, %v61_v45 }
  0x19   :  { %83 = vst.msk [vmem:[#allocation5 + $0x18] sm:$0xff] %vm39_vm0, %v75_v43  ;;  %84 = vst.msk [vmem:[#allocation5 + $0x20] sm:$0xff] %vm39_vm0, %v76_v47  ;;  %v70_v52 = vmax.f32 %v60_v49, 0.0 }
  0x1a   :  { %v77_v51 = vmin.f32 %v69_v48, 1.0  ;;  %v71_v53 = vmax.f32 %v63_v50, 0.0 }
  0x1b   :  { %v78_v54 = vmin.f32 %v70_v52, 1.0 }
  0x1c   :  { %85 = vst.msk [vmem:[#allocation5 + $0x28] sm:$0xff] %vm39_vm0, %v77_v51  ;;  %v79_v55 = vmin.f32 %v71_v53, 1.0 }
  0x1d   :  { %86 = vst.msk [vmem:[#allocation5 + $0x30] sm:$0xff] %vm39_vm0, %v78_v54 }
  0x1e   :  { %87 = vst.msk [vmem:[#allocation5 + $0x38] sm:$0xff] %vm39_vm0, %v79_v55 }
  0x1f   :  { %140 = shalt.err (!%p137_p9)
}
  0x20   :  { %99 = dma.vmem_to_hbm [thread:$0]  %s94_s13, 1024, %s204_s1, [#allocation4], %s154_s9, %s154_s9, %s155_s10  }
  0x21   :  { %151 = dma.done.wait [#allocation4], 1024  }
  0x22   :  { %152 = vsyncadd [#allocation4], 4294966272 }
  0x23   :  { %103 = vsyncpa [#allocation3], 1 }
  0x24   :  { %104 = vsyncpa [#allocation4], 1 }

</bundles_post_ra>
